<compile_context>
chip_gen: v7x
topology: tpu7x:2x2x1
jax: 0.10.0
libtpu: 0.0.40
codegen_flags: <defaults>
</compile_context>

<pallas_src>
import functools

import jax
import jax.numpy as jnp
from jax.experimental import pallas as pl
from jax.experimental.pallas import tpu as pltpu


# ----------------------------------------------------------------------------
# clip_project kernels (Linear[-Tanh-Linear]) -- fully fused, single call
# ----------------------------------------------------------------------------

def _clip_mlp_kernel(x_ref, w1_ref, b1_ref, w2_ref, b2_ref, o_ref):
    h = jnp.dot(x_ref[...].astype(jnp.bfloat16), w1_ref[...],
                preferred_element_type=jnp.float32) + b1_ref[...]
    h = jnp.tanh(h)                                       # elementwise in f32
    y = jnp.dot(h.astype(jnp.bfloat16), w2_ref[...],
                preferred_element_type=jnp.float32) + b2_ref[...]
    o_ref[...] = y.astype(o_ref.dtype)


def clip_project_mlp(prefix, w1, b1, w2, b2):
    m = prefix.shape[0]
    n = w2.shape[1]
    vmem = pl.BlockSpec(memory_space=pltpu.MemorySpace.VMEM)
    return pl.pallas_call(
        _clip_mlp_kernel,
        out_shape=jax.ShapeDtypeStruct((m, n), jnp.float32),
        in_specs=[vmem] * 5,
        out_specs=vmem,
    )(prefix, w1, b1, w2, b2)


def _clip_linear_kernel(x_ref, w_ref, b_ref, o_ref):
    y = jnp.dot(x_ref[...].astype(jnp.bfloat16), w_ref[...],
                preferred_element_type=jnp.float32) + b_ref[...]
    o_ref[...] = y.astype(o_ref.dtype)


def clip_project_linear(prefix, w, b):
    m = prefix.shape[0]
    n = w.shape[1]
    vmem = pl.BlockSpec(memory_space=pltpu.MemorySpace.VMEM)
    return pl.pallas_call(
        _clip_linear_kernel,
        out_shape=jax.ShapeDtypeStruct((m, n), jnp.float32),
        in_specs=[vmem] * 3,
        out_specs=vmem,
    )(prefix, w, b)


# ----------------------------------------------------------------------------
# Fused GPT-2 stack kernel: grid over layers, residual stream = output block
# ----------------------------------------------------------------------------

def _gpt2_stack_kernel(x_ref, mask_ref,
                       ln1g_ref, ln1b_ref, wqkv_ref, bqkv_ref,
                       wproj_ref, bproj_ref, ln2g_ref, ln2b_ref,
                       wfc_ref, bfc_ref, wmp_ref, bmp_ref,
                       lnfg_ref, lnfb_ref,
                       h_ref,
                       *, batch, seq, n_head):
    layer = pl.program_id(0)
    n_layer = pl.num_programs(0)

    B, S, H = batch, seq, n_head
    BS, E = h_ref.shape
    dh = E // H
    scale = 1.0 / float(dh) ** 0.5
    f32, bf16 = jnp.float32, jnp.bfloat16

    @pl.when(layer == 0)
    def _():
        h_ref[...] = x_ref[...].astype(f32)       # seed residual stream (bf16 -> f32)

    def layer_norm(x, g, b):
        mu = jnp.mean(x, axis=-1, keepdims=True)
        xc = x - mu
        var = jnp.mean(xc * xc, axis=-1, keepdims=True)
        return xc * jax.lax.rsqrt(var + 1e-5) * g + b

    def mm(a, w):  # bf16 operands on the MXU, f32 accumulation (weights already bf16)
        return jnp.dot(a.astype(bf16), w, preferred_element_type=f32)

    h = h_ref[...]                                         # (B*S, E) residual, f32

    # --------------------------- attention block ---------------------------
    x2 = layer_norm(h, ln1g_ref[0], ln1b_ref[0])           # (B*S, E)
    qkv = mm(x2, wqkv_ref[0]) + bqkv_ref[0]                # ONE (BS,3E) lane-dense matmul

    # causal + key-padding additive bias built in-kernel (a few VPU ops, no HBM slab)
    rows = jax.lax.broadcasted_iota(jnp.int32, (S, S), 0)
    cols = jax.lax.broadcasted_iota(jnp.int32, (S, S), 1)
    keep = jnp.logical_and(rows >= cols, (mask_ref[...] > 0.5)[:, None, :])  # (B,S,S)
    bias = jnp.where(keep, 0.0, -1e9).astype(f32)

    ctx_heads = []
    for hd in range(H):                                    # static unroll over heads only
        q = qkv[:, hd * dh:(hd + 1) * dh].reshape(B, S, dh) * scale
        k = qkv[:, E + hd * dh:E + (hd + 1) * dh].reshape(B, S, dh)
        v = qkv[:, 2 * E + hd * dh:2 * E + (hd + 1) * dh].reshape(B, S, dh)
        s = jnp.einsum('bqd,bkd->bqk', q.astype(bf16), k.astype(bf16),
                       preferred_element_type=f32) + bias              # (B,S,S)
        s = s - jnp.max(s, axis=-1, keepdims=True)
        e = jnp.exp(s)
        p = e * pl.reciprocal(jnp.sum(e, axis=-1, keepdims=True), approx=True)
        ctx = jnp.einsum('bqk,bkd->bqd', p.astype(bf16), v.astype(bf16),
                         preferred_element_type=f32)                   # (B,S,dh)
        ctx_heads.append(ctx.reshape(BS, dh))
    # concat(heads) @ W_proj: ONE full-E contraction, accumulation in registers
    attn = mm(jnp.concatenate(ctx_heads, axis=-1), wproj_ref[0]) + bproj_ref[0]
    h = h + attn

    # ------------------------------ MLP block ------------------------------
    x2 = layer_norm(h, ln2g_ref[0], ln2b_ref[0])
    m = mm(x2, wfc_ref[0]) + bfc_ref[0]
    m = 0.5 * m * (1.0 + jnp.tanh(0.7978845608028654 * (m + 0.044715 * m * m * m)))
    h = h + mm(m, wmp_ref[0]) + bmp_ref[0]

    h_ref[...] = h                                          # carry residual to next layer

    # ------------------------- final LN (last layer) -----------------------
    @pl.when(layer == n_layer - 1)
    def _():
        h_ref[...] = layer_norm(h, lnfg_ref[...], lnfb_ref[...])


def gpt2_stack_forward(x0, mask, p, *, n_head):
    BS, E = x0.shape
    B, S = mask.shape
    L = p["ln1_g"].shape[0]

    def const_spec(arr):
        nd = arr.ndim
        return pl.BlockSpec(arr.shape, lambda l, _nd=nd: (0,) * _nd)

    def layer_spec(arr):
        nd = arr.ndim
        blk = (1,) + arr.shape[1:]
        return pl.BlockSpec(blk, lambda l, _nd=nd: (l,) + (0,) * (_nd - 1))

    in_specs = [
        const_spec(x0), const_spec(mask),
        layer_spec(p["ln1_g"]), layer_spec(p["ln1_b"]),
        layer_spec(p["w_qkv"]), layer_spec(p["b_qkv"]),
        layer_spec(p["w_proj"]), layer_spec(p["b_proj"]),
        layer_spec(p["ln2_g"]), layer_spec(p["ln2_b"]),
        layer_spec(p["w_fc"]), layer_spec(p["b_fc"]),
        layer_spec(p["w_mp"]), layer_spec(p["b_mp"]),
        const_spec(p["lnf_g"]), const_spec(p["lnf_b"]),
    ]

    return pl.pallas_call(
        functools.partial(_gpt2_stack_kernel, batch=B, seq=S, n_head=n_head),
        out_shape=jax.ShapeDtypeStruct((BS, E), jnp.float32),   # final-LN'd residual
        grid=(L,),
        in_specs=in_specs,
        out_specs=pl.BlockSpec((BS, E), lambda l: (0, 0)),       # resident across layers
        compiler_params=pltpu.CompilerParams(
            dimension_semantics=("arbitrary",),                  # residual carried
            vmem_limit_bytes=64 * 1024 * 1024),
    )(x0, mask,
      p["ln1_g"], p["ln1_b"], p["w_qkv"], p["b_qkv"],
      p["w_proj"], p["b_proj"], p["ln2_g"], p["ln2_b"],
      p["w_fc"], p["b_fc"], p["w_mp"], p["b_mp"],
      p["lnf_g"], p["lnf_b"])


# ----------------------------------------------------------------------------
# Tied lm_head: separate pallas_call tiled over (row, vocab) blocks
# ----------------------------------------------------------------------------

def _lm_head_kernel(h_ref, w_ref, o_ref):
    o_ref[...] = jnp.dot(h_ref[...].astype(jnp.bfloat16), w_ref[...],
                         preferred_element_type=jnp.float32).astype(o_ref.dtype)


def _pick_tile(total, cap, quantum):
    t = min(total, max(quantum, (cap // quantum) * quantum))
    t = max(quantum, (t // quantum) * quantum)
    while total % t:
        t -= quantum
    return t


def lm_head_forward(hf, lm_w, *, row_cap=256, vocab_cap=512):
    BS, E = hf.shape
    Vpad = lm_w.shape[1]
    tr = _pick_tile(BS, row_cap, 8)
    tv = _pick_tile(Vpad, vocab_cap, 128)
    return pl.pallas_call(
        _lm_head_kernel,
        out_shape=jax.ShapeDtypeStruct((BS, Vpad), jnp.float32),
        grid=(BS // tr, Vpad // tv),
        in_specs=[pl.BlockSpec((tr, E), lambda i, j: (i, 0)),
                  pl.BlockSpec((E, tv), lambda i, j: (0, j))],
        out_specs=pl.BlockSpec((tr, tv), lambda i, j: (i, j)),
        compiler_params=pltpu.CompilerParams(
            dimension_semantics=("parallel", "parallel")),
    )(hf, lm_w)


# ----------------------------------------------------------------------------
# Scaled-down GPT-2 + CaptionModel (parameters built deterministically in-script)
# ----------------------------------------------------------------------------

class CaptionModelPallas:
    def __init__(self, prefix_length, prefix_size=16, *, n_embd=32, n_head=2,
                 n_layer=2, vocab=100, n_pos=64, seed=0):
        assert n_embd % n_head == 0
        self.prefix_length = prefix_length
        self.prefix_size = prefix_size
        self.E = n_embd
        self.H = n_head
        self.L = n_layer
        self.V = vocab
        E = n_embd

        key = jax.random.PRNGKey(seed)

        def nrm(k, shape, scale=0.02):
            return scale * jax.random.normal(k, shape, dtype=jnp.float32)

        keys = iter(jax.random.split(key, 4 + 4 * n_layer))

        # GPT-2 embeddings (wte is also the tied lm_head weight); f32 for the gather
        self.wte = nrm(next(keys), (vocab, E))
        self.wpe = nrm(next(keys), (n_pos, E))

        # Transformer blocks, stacked over layers; matmul weights cast to bf16 ONCE.
        w_qkv, w_proj, w_fc, w_mp = [], [], [], []
        for _ in range(n_layer):
            w_qkv.append(nrm(next(keys), (E, 3 * E)))   # Conv1D convention (in, out)
            w_proj.append(nrm(next(keys), (E, E)))
            w_fc.append(nrm(next(keys), (E, 4 * E)))
            w_mp.append(nrm(next(keys), (4 * E, E)))

        ones = lambda *s: jnp.ones(s, jnp.float32)
        zeros = lambda *s: jnp.zeros(s, jnp.float32)
        bf16 = jnp.bfloat16
        self.params = dict(
            ln1_g=ones(n_layer, 1, E), ln1_b=zeros(n_layer, 1, E),
            w_qkv=jnp.stack(w_qkv).astype(bf16), b_qkv=zeros(n_layer, 1, 3 * E),
            w_proj=jnp.stack(w_proj).astype(bf16), b_proj=zeros(n_layer, 1, E),
            ln2_g=ones(n_layer, 1, E), ln2_b=zeros(n_layer, 1, E),
            w_fc=jnp.stack(w_fc).astype(bf16), b_fc=zeros(n_layer, 1, 4 * E),
            w_mp=jnp.stack(w_mp).astype(bf16), b_mp=zeros(n_layer, 1, E),
            lnf_g=ones(1, E), lnf_b=zeros(1, E),
        )

        # Tied lm_head: transpose + pad to lane-dense multiple of 128 ONCE, stored bf16.
        self.Vpad = ((vocab + 127) // 128) * 128
        self.params["lm_w"] = (jnp.zeros((E, self.Vpad), jnp.float32)
                               .at[:, :vocab].set(self.wte.T)).astype(bf16)

        # clip_project: MLP branch for prefix_length <= 10, single Linear otherwise
        out_dim = E * prefix_length
        if prefix_length > 10:
            self.clip_is_mlp = False
            self.clip_w1 = nrm(next(keys), (prefix_size, out_dim)).astype(bf16)
            self.clip_b1 = zeros(1, out_dim)
            self.clip_w2 = None
            self.clip_b2 = None
        else:
            self.clip_is_mlp = True
            hidden = out_dim // 2
            self.clip_w1 = nrm(next(keys), (prefix_size, hidden)).astype(bf16)
            self.clip_b1 = zeros(1, hidden)
            self.clip_w2 = nrm(next(keys), (hidden, out_dim)).astype(bf16)
            self.clip_b2 = zeros(1, out_dim)

    # ----- CaptionModel API -----------------------------------------------
    def get_dummy_token(self, batch_size):
        # torch.int64 in the reference; int32 here (JAX default x64 disabled).
        return jnp.zeros((batch_size, self.prefix_length), dtype=jnp.int32)

    def __call__(self, tokens, prefix, mask=None, labels=None):
        B = tokens.shape[0]

        # embedding_text = self.gpt.transformer.wte(tokens)   (gather: plain-JAX glue)
        embedding_text = jnp.take(self.wte, tokens, axis=0)            # (B, S_tok, E)

        # prefix_projections = clip_project(prefix).view(-1, L_pref, E)
        if self.clip_is_mlp:
            proj = clip_project_mlp(prefix, self.clip_w1, self.clip_b1,
                                    self.clip_w2, self.clip_b2)
        else:
            proj = clip_project_linear(prefix, self.clip_w1, self.clip_b1)
        prefix_projections = proj.reshape(-1, self.prefix_length, self.E)

        embedding_cat = jnp.concatenate([prefix_projections, embedding_text], axis=1)
        Bc, S, E = embedding_cat.shape

        if labels is not None:
            dummy = self.get_dummy_token(B)
            labels = jnp.concatenate([dummy, tokens], axis=1)

        # positions folded in once; residual seed passed bf16 (halves its VMEM residency)
        x0 = (embedding_cat + self.wpe[:S][None, :, :]).reshape(Bc * S, E)
        x0 = x0.astype(jnp.bfloat16)
        if mask is None:
            mask = jnp.ones((Bc, S), jnp.float32)
        mask = mask.astype(jnp.float32)                                 # (B, S) key mask

        # fused layer-grid kernel (all blocks + final LN), then tiled tied lm_head
        hf = gpt2_stack_forward(x0, mask, self.params, n_head=self.H)   # (B*S, E) f32
        logits_pad = lm_head_forward(hf, self.params["lm_w"])           # (B*S, Vpad)
        logits = logits_pad[:, :self.V].reshape(Bc, S, self.V)

        loss = None
        if labels is not None:
            # HF GPT-2 semantics: shift logits/labels, mean cross-entropy (glue).
            shift_logits = logits[:, :-1, :]
            shift_labels = labels[:, 1:]
            logp = jax.nn.log_softmax(shift_logits, axis=-1)
            nll = -jnp.take_along_axis(logp, shift_labels[..., None], axis=-1)[..., 0]
            loss = jnp.mean(nll)
        return logits, loss


# ----------------------------------------------------------------------------
# Demo
# ----------------------------------------------------------------------------

if __name__ == "__main__":
    B = 2           # batch
    S_TOK = 8       # caption token length
    PREFIX_LEN = 8  # <= 10 -> MLP branch of clip_project
    PREFIX_SIZE = 16
    VOCAB = 100

    model = CaptionModelPallas(
        prefix_length=PREFIX_LEN, prefix_size=PREFIX_SIZE,
        n_embd=32, n_head=2, n_layer=2, vocab=VOCAB, n_pos=64, seed=0,
    )

    key = jax.random.PRNGKey(0)
    k_tok, k_pre, k_mask = jax.random.split(key, 3)
    tokens = jax.random.randint(k_tok, (B, S_TOK), 0, VOCAB, dtype=jnp.int32)
    prefix = jax.random.normal(k_pre, (B, PREFIX_SIZE), dtype=jnp.float32)
    mask = jnp.ones((B, PREFIX_LEN + S_TOK), dtype=jnp.float32)

    logits, loss = model(tokens, prefix, mask=mask, labels=tokens)
    jax.block_until_ready(logits)
    jax.block_until_ready(loss)

    assert logits.shape == (B, PREFIX_LEN + S_TOK, VOCAB)
    assert bool(jnp.isfinite(loss))
    assert bool(jnp.all(jnp.isfinite(logits)))
    print("KERNEL_OK")
</pallas_src>

<mosaic_0001>
module attributes {stable_mosaic.version = 11 : i64} {
  func.func @_clip_mlp_kernel(%arg0: memref<2x16xf32, #tpu.memory_space<vmem>>, %arg1: memref<16x128xbf16, #tpu.memory_space<vmem>>, %arg2: memref<1x128xf32, #tpu.memory_space<vmem>>, %arg3: memref<128x256xbf16, #tpu.memory_space<vmem>>, %arg4: memref<1x256xf32, #tpu.memory_space<vmem>>, %arg5: memref<2x256xf32, #tpu.memory_space<vmem>>) attributes {dimension_semantics = [], scalar_prefetch = 0 : i64, scratch_operands = 0 : i64, tpu.core_type = #tpu.core_type<tc>} {
    %c0 = arith.constant 0 : index
    %c0_0 = arith.constant 0 : index
    %0 = vector.load %arg0[%c0, %c0_0] : memref<2x16xf32, #tpu.memory_space<vmem>>, vector<2x16xf32>
    %1 = arith.truncf %0 : vector<2x16xf32> to vector<2x16xbf16>
    %c0_1 = arith.constant 0 : index
    %c0_2 = arith.constant 0 : index
    %2 = vector.load %arg1[%c0_1, %c0_2] : memref<16x128xbf16, #tpu.memory_space<vmem>>, vector<16x128xbf16>
    %cst = arith.constant dense<0.000000e+00> : vector<2x128xf32>
    %3 = tpu.matmul %1, %2, %cst {dimension_numbers = #tpu.dot_dimension_numbers<[1], [0], [0], [1], [0, 0, 1, 1], [], []>} : vector<2x16xbf16>, vector<16x128xbf16>, vector<2x128xf32> -> vector<2x128xf32>
    %c0_3 = arith.constant 0 : index
    %c0_4 = arith.constant 0 : index
    %4 = vector.load %arg2[%c0_3, %c0_4] : memref<1x128xf32, #tpu.memory_space<vmem>>, vector<1x128xf32>
    %5 = vector.broadcast %4 : vector<1x128xf32> to vector<2x128xf32>
    %6 = arith.addf %3, %5 : vector<2x128xf32>
    %7 = math.tanh %6 : vector<2x128xf32>
    %8 = arith.truncf %7 : vector<2x128xf32> to vector<2x128xbf16>
    %c0_5 = arith.constant 0 : index
    %c0_6 = arith.constant 0 : index
    %9 = vector.load %arg3[%c0_5, %c0_6] : memref<128x256xbf16, #tpu.memory_space<vmem>>, vector<128x256xbf16>
    %cst_7 = arith.constant dense<0.000000e+00> : vector<2x256xf32>
    %10 = tpu.matmul %8, %9, %cst_7 {dimension_numbers = #tpu.dot_dimension_numbers<[1], [0], [0], [1], [0, 0, 1, 1], [], []>} : vector<2x128xbf16>, vector<128x256xbf16>, vector<2x256xf32> -> vector<2x256xf32>
    %c0_8 = arith.constant 0 : index
    %c0_9 = arith.constant 0 : index
    %11 = vector.load %arg4[%c0_8, %c0_9] : memref<1x256xf32, #tpu.memory_space<vmem>>, vector<1x256xf32>
    %12 = vector.broadcast %11 : vector<1x256xf32> to vector<2x256xf32>
    %13 = arith.addf %10, %12 : vector<2x256xf32>
    %c0_10 = arith.constant 0 : index
    %c0_11 = arith.constant 0 : index
    %14 = vector.load %arg5[%c0_10, %c0_11] : memref<2x256xf32, #tpu.memory_space<vmem>>, vector<2x256xf32>
    tpu.vector_store %arg5[%c0_10, %c0_11], %13 {strides = array<i32>} : memref<2x256xf32, #tpu.memory_space<vmem>>, vector<2x256xf32>,
    return
  }
}

</mosaic_0001>

<bundles_post_ra>
// kernel: tpu_custom_call.1
= control target key start
LH: loop header
LB: loop body
LE: loop exit
PB: predicated region body
PF: predicated region fallthrough
CT: control target
= control target key end

     0   :  { %10 = vsyncpa [#allocation3], 0  ;;  %s556_s0 = inlined_call_operand.hbm [shape: f32[2,16], index: 0, kind: input, shape index: {}]   ;;  %s557_s1 = inlined_call_operand.hbm [shape: bf16[16,128], index: 1, kind: input, shape index: {}]   ;;  %s558_s2 = inlined_call_operand.vmem [shape: f32[1,128], index: 2, kind: input, shape index: {}]   ;;  %s559_s3 = inlined_call_operand.hbm [shape: bf16[128,256], index: 3, kind: input, shape index: {}]   ;;  %s560_s4 = inlined_call_operand.vmem [shape: f32[1,256], index: 4, kind: input, shape index: {}]   ;;  %s561_s5 = inlined_call_operand.hbm [shape: f32[2,256], index: 5, kind: output, shape index: {}]  }
   0x1   :  { %11 = vsyncpa [#allocation6], 0 }
   0x2   :  { %12 = vsyncpa [#allocation4], 0  ;;  %s461_s18 = smov [#allocation5]   ;;  %s367_s22 = scalar_lea.hbm %s557_s1, 128 }
   0x3   :  { %s28_s19 = sshll.u32 %s461_s18, 4  ;;  %p368_p0 = scmp.ne.s32.totalorder %s557_s1, %s367_s22  ;;  %s29_s19 = int_to_ptr.vmem [resolvable:$true] %s28_s19 }
   0x4   :  { %p371_p1 = scmp.lt.u32.totalorder %s367_s22, %s557_s1 }
   0x6   :  { %p373_p2 = pnand %p371_p1, %p368_p0 }
   0x8   :  { %376 = shalt.err (!%p373_p2)
}
   0x9   :  { %s377_s27 = scalar_lea.vmem %s29_s19, 128  ;;  %p382_p4 = scmp.lt.s32.totalorder %s29_s19, %s29_s19 }
   0xa   :  { %p378_p3 = scmp.ne.s32.totalorder %s29_s19, %s377_s27  ;;  %p383_p5 = scmp.lt.s32.totalorder %s377_s27, %s377_s27 }
   0xc   :  { %p384_p6 = por %p383_p5, %p382_p4 }
   0xe   :  { %p385_p7 = pnand %p384_p6, %p378_p3 }
  0x10   :  { %388 = shalt.err (!%p385_p7)
}
  0x11   :  { %s462_s28 = smov 64   ;;  %s463_s29 = smov 4  }
  0x12   :  { %34 = dma.hbm_to_vmem [thread:$0]  %s557_s1, 128, %s29_s19, [#allocation6], %s462_s28, %s462_s28, %s463_s29  }
  0x13   :  { %s464_s7 = smov [#allocation2]   ;;  %s465_s9 = smov [#allocation7]  }
  0x14   :  { %s19_s8 = sshll.u32 %s464_s7, 4  ;;  %s42_s10 = sshll.u32 %s465_s9, 4  ;;  %s20_s8 = int_to_ptr.vmem [resolvable:$true] %s19_s8  ;;  %s43_s10 = int_to_ptr.vmem [resolvable:$true] %s42_s10 }
  0x15   :  { %s389_s13 = scalar_lea.hbm %s556_s0, 32 }
  0x16   :  { %p390_p8 = scmp.ne.s32.totalorder %s556_s0, %s389_s13  ;;  %p393_p9 = scmp.lt.u32.totalorder %s389_s13, %s556_s0 }
  0x18   :  { %p395_p10 = pnand %p393_p9, %p390_p8 }
  0x1a   :  { %398 = shalt.err (!%p395_p10)
}
  0x1b   :  { %s399_s1 = scalar_lea.vmem %s20_s8, 32  ;;  %p404_p12 = scmp.lt.s32.totalorder %s20_s8, %s20_s8 }
  0x1c   :  { %p400_p11 = scmp.ne.s32.totalorder %s20_s8, %s399_s1  ;;  %p405_p13 = scmp.lt.s32.totalorder %s399_s1, %s399_s1 }
  0x1e   :  { %p406_p0 = por %p405_p13, %p404_p12 }
  0x20   :  { %p407_p1 = pnand %p406_p0, %p400_p11 }
  0x22   :  { %410 = shalt.err (!%p407_p1)
}
  0x23   :  { %22 = dma.hbm_to_vmem [thread:$0]  %s556_s0, 32, %s20_s8, [#allocation3]  }
  0x24   :  { %s411_s22 = scalar_lea.hbm %s559_s3, 2048 }
  0x25   :  { %p412_p2 = scmp.ne.s32.totalorder %s559_s3, %s411_s22  ;;  %p415_p3 = scmp.lt.u32.totalorder %s411_s22, %s559_s3 }
  0x27   :  { %p417_p4 = pnand %p415_p3, %p412_p2 }
  0x29   :  { %420 = shalt.err (!%p417_p4)
}
  0x2a   :  { %s421_s27 = scalar_lea.vmem %s43_s10, 2048  ;;  %p426_p6 = scmp.lt.s32.totalorder %s43_s10, %s43_s10 }
  0x2b   :  { %p422_p5 = scmp.ne.s32.totalorder %s43_s10, %s421_s27  ;;  %p427_p7 = scmp.lt.s32.totalorder %s421_s27, %s421_s27 }
  0x2d   :  { %p428_p8 = por %p427_p7, %p426_p6 }
  0x2f   :  { %p429_p9 = pnand %p428_p8, %p422_p5 }
  0x31   :  { %432 = shalt.err (!%p429_p9)
}
  0x32   :  { %s466_s0 = smov 128   ;;  %s467_s28 = smov 8  }
  0x33   :  { %48 = dma.hbm_to_vmem [thread:$0]  %s559_s3, 2048, %s43_s10, [#allocation6], %s466_s0, %s466_s0, %s467_s28  }
  0x34   :  { %455 = dma.done.wait [#allocation3], 32  }
  0x35   :  { %456 = vsyncadd [#allocation3], 4294967264 }
  0x36   :  { %457 = dma.done.wait [#allocation6], 2176  }
  0x37   :  { %458 = vsyncadd [#allocation6], 4294965120  ;;  %v468_v0 = vmov 0.0   ;;  %vm469_vm0 = vmmov 0   ;;  %v340_v1 = vld [vmem:[#allocation5] sm:$0xff]   ;;  %vm78_vm1 = vcmask 130048   ;;  %v142_v29 = vlaneseq }
  0x38   :  { %323 = vmatprep.subr.bf16.mxu0 %v468_v0  ;;  %325 = vmatprep.mubr.msk.bf16.mxu0 %vm469_vm0, %v468_v0  ;;  %v61_v2 = vld [vmem:[#allocation2] sm:$0x3]  ;;  %v341_v4 = vld [vmem:[#allocation7 + $0x4] ss:$8 sps:$4 sm:$0xff]   ;;  %v343_v5 = vld [vmem:[#allocation7] ss:$8 sps:$4 sm:$0xff]  }
  0x39   :  { %324 = vmatpush3.bf16.msra.mxu0 %v340_v1  ;;  %v62_v3 = vpack.c.bf16 %v61_v2, %v61_v2  ;;  %v344_v6 = vld [vmem:[#allocation7 + $0x14] ss:$8 sps:$4 sm:$0xff]   ;;  %232 = vmatprep.subr.bf16.mxu1 %v341_v4  ;;  %v346_v7 = vld [vmem:[#allocation7 + $0x10] ss:$8 sps:$4 sm:$0xff]   ;;  %v347_v8 = vld [vmem:[#allocation7 + $0x24] ss:$8 sps:$4 sm:$0xff]  }
  0x3a   :  { %233 = vmatpush1.bf16.msra.mxu1 %v343_v5  ;;  %v349_v9 = vld [vmem:[#allocation7 + $0x20] ss:$8 sps:$4 sm:$0xff]   ;;  %v350_v10 = vld [vmem:[#allocation7 + $0x34] ss:$8 sps:$4 sm:$0xff]   ;;  %v352_v11 = vld [vmem:[#allocation7 + $0x30] ss:$8 sps:$4 sm:$0xff]  }
  0x3b   :  { %234 = vmatprep.subr.bf16.mxu1 %v344_v6  ;;  %v353_v12 = vld [vmem:[#allocation7 + $0x44] ss:$8 sps:$4 sm:$0xff]   ;;  %v355_v13 = vld [vmem:[#allocation7 + $0x40] ss:$8 sps:$4 sm:$0xff]   ;;  %v356_v14 = vld [vmem:[#allocation7 + $0x54] ss:$8 sps:$4 sm:$0xff]  }
  0x3c   :  { %326 = vmatmul.mubr.msk.bf16.vlgmr.msra.gmra.mrb[0].mxu0 %vm78_vm1, %v62_v3  ;;  %v358_v15 = vld [vmem:[#allocation7 + $0x50] ss:$8 sps:$4 sm:$0xff]   ;;  %v359_v16 = vld [vmem:[#allocation7 + $0x64] ss:$8 sps:$4 sm:$0xff]   ;;  %v361_v17 = vld [vmem:[#allocation7 + $0x60] ss:$8 sps:$4 sm:$0xff]  }
  0x3d   :  { %v362_v18 = vld [vmem:[#allocation7 + $0x74] ss:$8 sps:$4 sm:$0xff]   ;;  %v364_v19 = vld [vmem:[#allocation7 + $0x70] ss:$8 sps:$4 sm:$0xff]   ;;  %v470_v20 = vmov 0   ;;  %v143_v30 = vshrl.u32 %v142_v29, 7 }
  0x3e   :  { %235 = vmatpush1.bf16.msra.mxu1 %v346_v7  ;;  %264 = vmatprep.mubr.bf16.mxu1 %v470_v20  ;;  %v301_v21 = vld [vmem:[%s558_s2] ss:$0 sm:$0xff]  ;;  %s471_s2 = smov [#allocation8]  }
  0x3f   :  { %236 = vmatprep.subr.bf16.mxu1 %v347_v8  ;;  %v144_v31 = vsub.s32 0, %v143_v30  ;;  %v140_v32 = vld [vmem:[%s560_s4] sm:$0x3]  ;;  %v148_v33 = vsub.s32 1, %v143_v30  ;;  %s291_s9 = sshll.u32 %s471_s2, 4  ;;  %s292_s9 = int_to_ptr.vmem [resolvable:$true] %s291_s9 }
  0x40   :  { %s433_s10 = scalar_lea.vmem %s292_s9, 64  ;;  %p438_p11 = scmp.lt.s32.totalorder %s292_s9, %s292_s9 }
  0x41   :  { %v145_v34 = vrot.slane %v140_v32, %v144_v31  ;;  %v149_v35 = vrot.slane %v140_v32, %v148_v33  ;;  %p434_p10 = scmp.ne.s32.totalorder %s292_s9, %s433_s10  ;;  %p439_p12 = scmp.lt.s32.totalorder %s433_s10, %s433_s10 }
  0x42   :  { %237 = vmatpush1.bf16.msra.mxu1 %v349_v9 }
  0x43   :  { %238 = vmatprep.subr.bf16.mxu1 %v350_v10  ;;  %p440_p13 = por %p439_p12, %p438_p11 }
  0x45   :  { %p441_p0 = pnand %p440_p13, %p434_p10 }
  0x46   :  { %239 = vmatpush1.bf16.msra.mxu1 %v352_v11 }
  0x47   :  { %240 = vmatprep.subr.bf16.mxu1 %v353_v12 }
  0x4a   :  { %241 = vmatpush1.bf16.msra.mxu1 %v355_v13 }
  0x4b   :  { %242 = vmatprep.subr.bf16.mxu1 %v356_v14 }
  0x4e   :  { %243 = vmatpush1.bf16.msra.mxu1 %v358_v15 }
  0x4f   :  { %244 = vmatprep.subr.bf16.mxu1 %v359_v16 }
  0x52   :  { %245 = vmatpush1.bf16.msra.mxu1 %v361_v17 }
  0x53   :  { %246 = vmatprep.subr.bf16.mxu1 %v362_v18 }
  0x56   :  { %247 = vmatpush1.bf16.msra.mxu1 %v364_v19 }
 0x10f   :  { %v116_v22 = vpop.f32.mrb[0].mxu0 }
 0x110   :  { %v117_v23 = vadd.f32 %v301_v21, %v116_v22  ;;  %v327_v24 = vpop.f32.mrb[1].mxu0 }
 0x111   :  { %v119_v25 = vpop.f32.mrb[2].mxu0 }
 0x112   :  { %365 = vtanh.f32 %v117_v23  ;;  %v328_v26 = vpop.f32.mrb[3].mxu0 }
 0x11c   :  { %v366_v27 = vpop.eup %365 }
 0x11d   :  { %v123_v28 = vpack.c.bf16 %v366_v27, %v366_v27 }
 0x11f   :  { %265 = vmatmul.mubr.bf16.vlgmr.msra.gmra.mrb[0].mxu1 %v123_v28 }
 0x1f2   :  { %v266_v36 = vpop.f32.mrb[0].mxu1 }
 0x1f3   :  { %v267_v37 = vadd.f32 %v266_v36, %v145_v34  ;;  %v268_v38 = vpop.f32.mrb[1].mxu1 }
 0x1f4   :  { %v269_v39 = vadd.f32 %v268_v38, %v149_v35  ;;  %v270_v40 = vpop.f32.mrb[2].mxu1 }
 0x1f5   :  { %v271_v41 = vpop.f32.mrb[3].mxu1 }
 0x1f6   :  { %v275_v42 = vcombine.low %v267_v37, %v269_v39 }
 0x1f8   :  { %320 = vst.sshfl [vmem:[#allocation8] sm:$0x33 pattern:$0x76325410] %v275_v42 }
 0x1f9   :  { %444 = shalt.err (!%p441_p0)
}
 0x1fa   :  { %s445_s12 = scalar_lea.hbm %s561_s5, 64 }
 0x1fb   :  { %p446_p1 = scmp.ne.s32.totalorder %s561_s5, %s445_s12  ;;  %p449_p2 = scmp.lt.u32.totalorder %s445_s12, %s561_s5 }
 0x1fd   :  { %p451_p3 = pnand %p449_p2, %p446_p1 }
 0x1ff   :  { %454 = shalt.err (!%p451_p3)
}
 0x200   :  { %294 = dma.vmem_to_hbm [thread:$0]  %s292_s9, 64, %s561_s5, [#allocation4]  }
 0x201   :  { %459 = dma.done.wait [#allocation4], 64  }
 0x202   :  { %460 = vsyncadd [#allocation4], 4294967232 }
 0x203   :  { %298 = vsyncpa [#allocation3], 1 }
 0x204   :  { %299 = vsyncpa [#allocation6], 1 }
 0x205   :  { %300 = vsyncpa [#allocation4], 1 }

</bundles_post_ra>
